<compile_context>
chip_gen: v7x
topology: tpu7x:2x2x1
jax: 0.10.0
libtpu: 0.0.40
codegen_flags: <defaults>
</compile_context>

<pallas_src>
import functools

import jax
import jax.numpy as jnp
from jax.experimental import pallas as pl
from jax.experimental.pallas import tpu as pltpu

_INV_SQRT2 = 0.7071067811865476
# nn.GELU() default is the exact erf form. Flip to True on v5e only if a
# bundle dump shows the fused kernel is VALU-bound on the erf polynomial.
_GELU_TANH_APPROX = False


def _round_up(x, m):
    return ((x + m - 1) // m) * m


def _gelu(y):
    if _GELU_TANH_APPROX:
        c = 0.7978845608028654  # sqrt(2/pi); tanh -> EUP slot
        return 0.5 * y * (1.0 + jnp.tanh(c * (y + 0.044715 * y * y * y)))
    return 0.5 * y * (1.0 + jax.lax.erf(y * _INV_SQRT2))


# ---------------------------------------------------------------------------
# Generation-aware configuration.
# ---------------------------------------------------------------------------
def _tpu_config():
    """Return (generation, fused-path VMEM budget, vmem_limit_bytes)."""
    try:
        kind = jax.devices()[0].device_kind.lower()
    except Exception:
        kind = ""
    if "v5 lite" in kind or "v5e" in kind or "v5lite" in kind:
        gen = "v5e"
    elif "v6" in kind:
        gen = "v6e"
    elif "v7" in kind or "7x" in kind:
        gen = "v7x"
    else:
        gen = "unknown"

    if gen == "v6e":
        budget, limit = 28 << 20, 64 << 20
    elif gen == "v7x":
        # v7x: 64 MiB physical / 32 MiB default scoped VMEM per TensorCore.
        budget, limit = 24 << 20, 32 << 20
    elif gen == "v5e":
        budget, limit = 12 << 20, 32 << 20
    else:
        budget, limit = 12 << 20, 32 << 20
    return gen, budget, limit


def _probe_single_buffer():
    """Check whether BlockSpec(pipeline_mode=pl.Buffered(1)) is constructible."""
    try:
        pl.BlockSpec((8, 128), lambda i: (0, 0), pipeline_mode=pl.Buffered(1))
        return True
    except Exception:
        return False


_SINGLE_BUFFER_OK = _probe_single_buffer()


def _invariant_spec(block_shape, single_buffer):
    """BlockSpec for a grid-invariant operand (same block at every grid step)."""
    index_map = lambda i: (0, 0)
    if single_buffer:
        return pl.BlockSpec(block_shape, index_map, pipeline_mode=pl.Buffered(1))
    return pl.BlockSpec(block_shape, index_map)


def _choose_tm(batch, num_cores):
    """Pick the M tile and padded batch (B_pad is always a multiple of tm)."""
    b16 = _round_up(batch, 16)
    if b16 <= 256:
        tm = b16
        # v7x: give both TensorCores a batch tile when the batch allows it.
        if num_cores > 1 and b16 >= 32 and (b16 // 2) % 16 == 0:
            tm = b16 // 2
        return tm, b16
    tm = 512 if batch >= 1024 else 256
    return tm, _round_up(batch, tm)


# ---------------------------------------------------------------------------
# Parameter preparation (pad/cast ONCE, not per forward call).
# ---------------------------------------------------------------------------
def prepare_mlp_params(params):
    """params: list of (w:(Din,Dout) f32, b:(Dout,) f32) -> padded bf16/f32."""
    dims = [params[0][0].shape[0]] + [w.shape[1] for (w, _) in params]
    dims_pad = [_round_up(d, 128) for d in dims]
    layers = []
    for l, (w, b) in enumerate(params):
        dp_in, dp_out = dims_pad[l], dims_pad[l + 1]
        wp = jnp.pad(w.astype(jnp.bfloat16),
                     ((0, dp_in - w.shape[0]), (0, dp_out - w.shape[1])))
        bp = jnp.pad(b.astype(jnp.float32),
                     (0, dp_out - b.shape[0])).reshape(1, dp_out)
        layers.append((wp, bp))
    return {"layers": layers, "dims": dims, "dims_pad": dims_pad}


# ---------------------------------------------------------------------------
# Path 1: fused whole-MLP kernel (weights resident, activations never leave VMEM).
# ---------------------------------------------------------------------------
def _fused_mlp_kernel(x_ref, *refs, num_layers):
    o_ref = refs[2 * num_layers]
    h = x_ref[...]                       # bf16 (tm, D0_pad)
    for l in range(num_layers):
        w = refs[2 * l][...]             # bf16 (Dl_pad, Dl1_pad)
        b = refs[2 * l + 1][...]         # f32  (1, Dl1_pad)
        y = jnp.dot(h, w, preferred_element_type=jnp.float32) + b
        if l != num_layers - 1:
            h = _gelu(y).astype(jnp.bfloat16)   # bf16 back into the MXU
        else:
            h = y
    o_ref[...] = h.astype(o_ref.dtype)


def _fused_vmem_estimate(tm, dims_pad, weight_buf_factor):
    nbytes = 2 * tm * dims_pad[0] * 2                       # x, double-buffered bf16
    for l in range(len(dims_pad) - 1):
        nbytes += weight_buf_factor * (dims_pad[l] * dims_pad[l + 1] * 2
                                       + dims_pad[l + 1] * 4)
    nbytes += 2 * tm * dims_pad[-1] * 4                     # out, double-buffered f32
    nbytes += 4 * tm * max(dims_pad) * 4                    # live activations / headroom
    return nbytes


def _fused_call(xp, layers, dims_pad, tm, out_dtype, vmem_limit, *, single_buffer):
    b_pad = xp.shape[0]
    num_layers = len(layers)
    args = [xp]
    in_specs = [pl.BlockSpec((tm, dims_pad[0]), lambda i: (i, 0))]
    flops = 0
    bytes_accessed = xp.size * 2
    for l, (wp, bp) in enumerate(layers):
        dp_in, dp_out = dims_pad[l], dims_pad[l + 1]
        args += [wp, bp]
        in_specs += [_invariant_spec((dp_in, dp_out), single_buffer),
                     _invariant_spec((1, dp_out), single_buffer)]
        flops += 2 * b_pad * dp_in * dp_out
        bytes_accessed += wp.size * 2 + bp.size * 4
    bytes_accessed += b_pad * dims_pad[-1] * jnp.dtype(out_dtype).itemsize
    transcendentals = b_pad * sum(dims_pad[1:-1])

    return pl.pallas_call(
        functools.partial(_fused_mlp_kernel, num_layers=num_layers),
        out_shape=jax.ShapeDtypeStruct((b_pad, dims_pad[-1]), out_dtype),
        grid=(b_pad // tm,),
        in_specs=in_specs,
        out_specs=pl.BlockSpec((tm, dims_pad[-1]), lambda i: (i, 0)),
        compiler_params=pltpu.CompilerParams(
            dimension_semantics=("parallel",),
            vmem_limit_bytes=int(vmem_limit)),
        cost_estimate=pl.CostEstimate(
            flops=int(flops),
            transcendentals=int(transcendentals),
            bytes_accessed=int(bytes_accessed)),
    )(*args)


# ---------------------------------------------------------------------------
# Path 2: per-layer Linear (+GELU) on padded operands.
#   Preferred plan: full-K block (no K grid axis, no accumulator RMW).
#   Fallback plan: K-tiled accumulate/finalize with an f32 VMEM scratch.
# ---------------------------------------------------------------------------
def _linear_fullk_kernel(x_ref, w_ref, b_ref, o_ref, *, apply_gelu):
    y = jnp.dot(x_ref[...], w_ref[...],
                preferred_element_type=jnp.float32) + b_ref[...]
    if apply_gelu:
        y = _gelu(y)
    o_ref[...] = y.astype(o_ref.dtype)


def _linear_ktiled_kernel(x_ref, w_ref, b_ref, o_ref, acc_ref, *, apply_gelu):
    k = pl.program_id(2)

    @pl.when(k == 0)
    def _init():
        acc_ref[...] = jnp.zeros_like(acc_ref)

    acc_ref[...] += jnp.dot(x_ref[...], w_ref[...],
                            preferred_element_type=jnp.float32)

    @pl.when(k == pl.num_programs(2) - 1)
    def _finalize():
        y = acc_ref[...] + b_ref[...]
        if apply_gelu:
            y = _gelu(y)
        o_ref[...] = y.astype(o_ref.dtype)


def _divisor_candidates(dim, prefs):
    cands = {c for c in prefs if c <= dim and dim % c == 0}
    cands.add(dim)
    return sorted(cands, reverse=True)


def _select_linear_plan(tm, din_pad, dout_pad, gen, budget, out_bytes):
    # v6e/v7x have a 256-wide MXU -> prefer 512/256 N tiles; v5e keeps 128-aligned.
    tn_prefs = (512, 256, 128) if gen in ("v6e", "v7x") else (256, 128)
    tn_cands = _divisor_candidates(dout_pad, tn_prefs)
    tk_cands = _divisor_candidates(din_pad, (512, 256, 128))

    def fullk_bytes(tn):
        return (2 * tm * din_pad * 2 + 2 * din_pad * tn * 2
                + 2 * tn * 4 + 2 * tm * tn * out_bytes)

    for tn in tn_cands:
        if fullk_bytes(tn) <= budget:
            return "fullk", tn, din_pad

    def tiled_bytes(tn, tk):
        return (2 * tm * tk * 2 + 2 * tk * tn * 2 + 2 * tn * 4
                + 2 * tm * tn * out_bytes + tm * tn * 4)

    for tn in tn_cands:
        for tk in tk_cands:
            if tiled_bytes(tn, tk) <= budget:
                return "tiled", tn, tk
    return "tiled", 128, 128  # always VMEM-safe (128-aligned dims guaranteed)


def _linear_padded(x_pad, wp, bp, *, apply_gelu, out_dtype, tm, gen, budget,
                   vmem_limit, force_plan=None):
    """x_pad: (B_pad, Din_pad) bf16, wp: (Din_pad, Dout_pad) bf16, bp: (1, Dout_pad) f32."""
    b_pad, din_pad = x_pad.shape
    dout_pad = wp.shape[1]
    assert b_pad % tm == 0
    out_bytes = jnp.dtype(out_dtype).itemsize

    if force_plan is None:
        plan, tn, tk = _select_linear_plan(tm, din_pad, dout_pad, gen, budget,
                                           out_bytes)
    else:
        plan, tn, tk = force_plan

    flops = 2 * b_pad * din_pad * dout_pad
    transc = b_pad * dout_pad if apply_gelu else 0
    bytes_acc = (x_pad.size * x_pad.dtype.itemsize + wp.size * 2 + bp.size * 4
                 + b_pad * dout_pad * out_bytes)
    cost = pl.CostEstimate(flops=int(flops), transcendentals=int(transc),
                           bytes_accessed=int(bytes_acc))

    if plan == "fullk":
        return pl.pallas_call(
            functools.partial(_linear_fullk_kernel, apply_gelu=apply_gelu),
            out_shape=jax.ShapeDtypeStruct((b_pad, dout_pad), out_dtype),
            grid=(b_pad // tm, dout_pad // tn),
            in_specs=[
                pl.BlockSpec((tm, din_pad), lambda i, j: (i, 0)),
                pl.BlockSpec((din_pad, tn), lambda i, j: (0, j)),
                pl.BlockSpec((1, tn), lambda i, j: (0, j)),
            ],
            out_specs=pl.BlockSpec((tm, tn), lambda i, j: (i, j)),
            compiler_params=pltpu.CompilerParams(
                dimension_semantics=("parallel", "parallel"),
                vmem_limit_bytes=int(vmem_limit)),
            cost_estimate=cost,
        )(x_pad, wp, bp)

    return pl.pallas_call(
        functools.partial(_linear_ktiled_kernel, apply_gelu=apply_gelu),
        out_shape=jax.ShapeDtypeStruct((b_pad, dout_pad), out_dtype),
        grid=(b_pad // tm, dout_pad // tn, din_pad // tk),
        in_specs=[
            pl.BlockSpec((tm, tk), lambda i, j, k: (i, k)),
            pl.BlockSpec((tk, tn), lambda i, j, k: (k, j)),
            pl.BlockSpec((1, tn), lambda i, j, k: (0, j)),
        ],
        out_specs=pl.BlockSpec((tm, tn), lambda i, j, k: (i, j)),
        scratch_shapes=[pltpu.VMEM((tm, tn), jnp.float32)],
        compiler_params=pltpu.CompilerParams(
            dimension_semantics=("parallel", "parallel", "arbitrary"),
            vmem_limit_bytes=int(vmem_limit)),
        cost_estimate=cost,
    )(x_pad, wp, bp)


# ---------------------------------------------------------------------------
# MLP forward (dispatch fused vs per-layer) + params.
# ---------------------------------------------------------------------------
def mlp_forward(x, prepared, *, out_dtype=jnp.float32, force_tiled=False):
    """x: (B, input_dim) f32/bf16. prepared: result of prepare_mlp_params."""
    B, din = x.shape
    dims, dims_pad = prepared["dims"], prepared["dims_pad"]
    layers = prepared["layers"]
    assert din == dims[0]

    gen, budget, vmem_limit = _tpu_config()
    num_cores = 2 if gen == "v7x" else 1
    tm, b_pad = _choose_tm(B, num_cores)

    xp = jnp.pad(x.astype(jnp.bfloat16),
                 ((0, b_pad - B), (0, dims_pad[0] - din)))

    weight_buf_factor = 1 if _SINGLE_BUFFER_OK else 2
    fused_fits = (not force_tiled and
                  _fused_vmem_estimate(tm, dims_pad, weight_buf_factor) <= budget)

    if fused_fits:
        try:
            out = _fused_call(xp, layers, dims_pad, tm, out_dtype, vmem_limit,
                              single_buffer=_SINGLE_BUFFER_OK)
            return out[:B, :dims[-1]]
        except Exception:
            if _SINGLE_BUFFER_OK:
                try:
                    out = _fused_call(xp, layers, dims_pad, tm, out_dtype,
                                      vmem_limit, single_buffer=False)
                    return out[:B, :dims[-1]]
                except Exception:
                    pass  # fall through to the tiled path

    # Per-layer path: hidden activations stay bf16 and padded (no re-pad / no
    # f32 round trip between layers); only the final layer emits out_dtype.
    h = xp
    n = len(layers)
    for idx, (wp, bp) in enumerate(layers):
        last = idx == n - 1
        h = _linear_padded(h, wp, bp, apply_gelu=not last,
                           out_dtype=(out_dtype if last else jnp.bfloat16),
                           tm=tm, gen=gen, budget=budget,
                           vmem_limit=vmem_limit)
    return h[:B, :dims[-1]]


def init_mlp_params(key, input_dim, output_dim, hidden_dims):
    """Deterministic init matching the layer shapes of the PyTorch MLP."""
    dims = [input_dim] + list(hidden_dims) + [output_dim]
    params = []
    for i in range(len(dims) - 1):
        key, kw, kb = jax.random.split(key, 3)
        bound = 1.0 / float(jnp.sqrt(jnp.float32(dims[i])))
        w = jax.random.uniform(kw, (dims[i], dims[i + 1]), jnp.float32,
                               -bound, bound)
        b = jax.random.uniform(kb, (dims[i + 1],), jnp.float32, -bound, bound)
        params.append((w, b))
    return params


# ---------------------------------------------------------------------------
# Pure-JAX references.
# ---------------------------------------------------------------------------
def mlp_reference_bf16(x, params):
    """Mirrors kernel numerics: bf16 MXU inputs, f32 accumulation/epilogue."""
    h = x.astype(jnp.bfloat16)
    n = len(params)
    for idx, (w, b) in enumerate(params):
        y = jnp.dot(h, w.astype(jnp.bfloat16),
                    preferred_element_type=jnp.float32) + b
        h = _gelu(y).astype(jnp.bfloat16) if idx != n - 1 else y
    return h


def mlp_reference_f32(x, params):
    h = x
    n = len(params)
    for idx, (w, b) in enumerate(params):
        h = h @ w + b
        if idx != n - 1:
            h = _gelu(h)
    return h


if __name__ == "__main__":
    key = jax.random.PRNGKey(0)
    k_x, k_p, k_x2, k_w2, k_b2 = jax.random.split(key, 5)

    batch = 8
    input_dim = 16
    hidden_dims = (32, 32)
    output_dim = 8

    x = jax.random.normal(k_x, (batch, input_dim), jnp.float32)
    raw_params = init_mlp_params(k_p, input_dim, output_dim, hidden_dims)
    params = prepare_mlp_params(raw_params)   # pad/cast weights exactly once

    ref_bf16 = mlp_reference_bf16(x, raw_params)
    ref_f32 = mlp_reference_f32(x, raw_params)

    # Fused single-kernel path (weights resident in VMEM across all layers).
    out = jax.block_until_ready(mlp_forward(x, params))
    assert out.shape == (batch, output_dim)
    assert jnp.allclose(out, ref_bf16, atol=2e-3, rtol=2e-3)
    assert jnp.allclose(out, ref_f32, atol=5e-2, rtol=5e-2)

    # Per-layer path (full-K blocks, bf16 hidden activations).
    out_t = jax.block_until_ready(mlp_forward(x, params, force_tiled=True))
    assert out_t.shape == (batch, output_dim)
    assert jnp.allclose(out_t, ref_bf16, atol=2e-3, rtol=2e-3)

    # Explicitly exercise the K-tiled accumulate/finalize fallback kernel.
    x2 = jax.random.normal(k_x2, (64, 384), jnp.float32)
    w2 = 0.05 * jax.random.normal(k_w2, (384, 256), jnp.float32)
    b2 = 0.1 * jax.random.normal(k_b2, (256,), jnp.float32)
    gen, budget, vmem_limit = _tpu_config()
    out2 = jax.block_until_ready(
        _linear_padded(x2.astype(jnp.bfloat16), w2.astype(jnp.bfloat16),
                       b2.reshape(1, -1).astype(jnp.float32),
                       apply_gelu=True, out_dtype=jnp.float32, tm=64,
                       gen=gen, budget=budget, vmem_limit=vmem_limit,
                       force_plan=("tiled", 128, 128)))
    ref2 = _gelu(jnp.dot(x2.astype(jnp.bfloat16), w2.astype(jnp.bfloat16),
                         preferred_element_type=jnp.float32) + b2)
    assert out2.shape == (64, 256)
    assert jnp.allclose(out2, ref2, atol=2e-3, rtol=2e-3)

    print("KERNEL_OK")
</pallas_src>

<mosaic_0001>
module attributes {stable_mosaic.version = 11 : i64} {
  func.func @_fused_mlp_kernel(%arg0: i32, %arg1: memref<16x128xbf16, #tpu.memory_space<vmem>>, %arg2: memref<128x128xbf16, #tpu.memory_space<vmem>>, %arg3: memref<1x128xf32, #tpu.memory_space<vmem>>, %arg4: memref<128x128xbf16, #tpu.memory_space<vmem>>, %arg5: memref<1x128xf32, #tpu.memory_space<vmem>>, %arg6: memref<128x128xbf16, #tpu.memory_space<vmem>>, %arg7: memref<1x128xf32, #tpu.memory_space<vmem>>, %arg8: memref<16x128xf32, #tpu.memory_space<vmem>>) attributes {dimension_semantics = [#tpu.dimension_semantics<parallel>], iteration_bounds = array<i64: 1>, scalar_prefetch = 0 : i64, scratch_operands = 0 : i64, tpu.core_type = #tpu.core_type<tc>, window_params = [{transform_indices = @transform_0, window_bounds = array<i64: 16, 128>}, {pipeline_mode = #tpu.pipeline_mode<synchronous>, transform_indices = @transform_1, window_bounds = array<i64: 128, 128>}, {pipeline_mode = #tpu.pipeline_mode<synchronous>, transform_indices = @transform_2, window_bounds = array<i64: 1, 128>}, {pipeline_mode = #tpu.pipeline_mode<synchronous>, transform_indices = @transform_3, window_bounds = array<i64: 128, 128>}, {pipeline_mode = #tpu.pipeline_mode<synchronous>, transform_indices = @transform_4, window_bounds = array<i64: 1, 128>}, {pipeline_mode = #tpu.pipeline_mode<synchronous>, transform_indices = @transform_5, window_bounds = array<i64: 128, 128>}, {pipeline_mode = #tpu.pipeline_mode<synchronous>, transform_indices = @transform_6, window_bounds = array<i64: 1, 128>}, {transform_indices = @transform_7, window_bounds = array<i64: 16, 128>}]} {
    %c0 = arith.constant 0 : index
    %c0_0 = arith.constant 0 : index
    %0 = vector.load %arg1[%c0, %c0_0] : memref<16x128xbf16, #tpu.memory_space<vmem>>, vector<16x128xbf16>
    %c0_1 = arith.constant 0 : index
    %c0_2 = arith.constant 0 : index
    %1 = vector.load %arg2[%c0_1, %c0_2] : memref<128x128xbf16, #tpu.memory_space<vmem>>, vector<128x128xbf16>
    %c0_3 = arith.constant 0 : index
    %c0_4 = arith.constant 0 : index
    %2 = vector.load %arg3[%c0_3, %c0_4] : memref<1x128xf32, #tpu.memory_space<vmem>>, vector<1x128xf32>
    %cst = arith.constant dense<0.000000e+00> : vector<16x128xf32>
    %3 = tpu.matmul %0, %1, %cst {dimension_numbers = #tpu.dot_dimension_numbers<[1], [0], [0], [1], [0, 0, 1, 1], [], []>} : vector<16x128xbf16>, vector<128x128xbf16>, vector<16x128xf32> -> vector<16x128xf32>
    %4 = vector.broadcast %2 : vector<1x128xf32> to vector<16x128xf32>
    %5 = arith.addf %3, %4 : vector<16x128xf32>
    %cst_5 = arith.constant 5.000000e-01 : f32
    %6 = vector.broadcast %cst_5 : f32 to vector<16x128xf32>
    %7 = arith.mulf %6, %5 : vector<16x128xf32>
    %cst_6 = arith.constant 0.707106769 : f32
    %8 = vector.broadcast %cst_6 : f32 to vector<16x128xf32>
    %9 = arith.mulf %5, %8 : vector<16x128xf32>
    %10 = math.erf %9 : vector<16x128xf32>
    %cst_7 = arith.constant 1.000000e+00 : f32
    %11 = vector.broadcast %cst_7 : f32 to vector<16x128xf32>
    %12 = arith.addf %11, %10 : vector<16x128xf32>
    %13 = arith.mulf %7, %12 : vector<16x128xf32>
    %14 = arith.truncf %13 : vector<16x128xf32> to vector<16x128xbf16>
    %c0_8 = arith.constant 0 : index
    %c0_9 = arith.constant 0 : index
    %15 = vector.load %arg4[%c0_8, %c0_9] : memref<128x128xbf16, #tpu.memory_space<vmem>>, vector<128x128xbf16>
    %c0_10 = arith.constant 0 : index
    %c0_11 = arith.constant 0 : index
    %16 = vector.load %arg5[%c0_10, %c0_11] : memref<1x128xf32, #tpu.memory_space<vmem>>, vector<1x128xf32>
    %cst_12 = arith.constant dense<0.000000e+00> : vector<16x128xf32>
    %17 = tpu.matmul %14, %15, %cst_12 {dimension_numbers = #tpu.dot_dimension_numbers<[1], [0], [0], [1], [0, 0, 1, 1], [], []>} : vector<16x128xbf16>, vector<128x128xbf16>, vector<16x128xf32> -> vector<16x128xf32>
    %18 = vector.broadcast %16 : vector<1x128xf32> to vector<16x128xf32>
    %19 = arith.addf %17, %18 : vector<16x128xf32>
    %cst_13 = arith.constant 5.000000e-01 : f32
    %20 = vector.broadcast %cst_13 : f32 to vector<16x128xf32>
    %21 = arith.mulf %20, %19 : vector<16x128xf32>
    %cst_14 = arith.constant 0.707106769 : f32
    %22 = vector.broadcast %cst_14 : f32 to vector<16x128xf32>
    %23 = arith.mulf %19, %22 : vector<16x128xf32>
    %24 = math.erf %23 : vector<16x128xf32>
    %cst_15 = arith.constant 1.000000e+00 : f32
    %25 = vector.broadcast %cst_15 : f32 to vector<16x128xf32>
    %26 = arith.addf %25, %24 : vector<16x128xf32>
    %27 = arith.mulf %21, %26 : vector<16x128xf32>
    %28 = arith.truncf %27 : vector<16x128xf32> to vector<16x128xbf16>
    %c0_16 = arith.constant 0 : index
    %c0_17 = arith.constant 0 : index
    %29 = vector.load %arg6[%c0_16, %c0_17] : memref<128x128xbf16, #tpu.memory_space<vmem>>, vector<128x128xbf16>
    %c0_18 = arith.constant 0 : index
    %c0_19 = arith.constant 0 : index
    %30 = vector.load %arg7[%c0_18, %c0_19] : memref<1x128xf32, #tpu.memory_space<vmem>>, vector<1x128xf32>
    %cst_20 = arith.constant dense<0.000000e+00> : vector<16x128xf32>
    %31 = tpu.matmul %28, %29, %cst_20 {dimension_numbers = #tpu.dot_dimension_numbers<[1], [0], [0], [1], [0, 0, 1, 1], [], []>} : vector<16x128xbf16>, vector<128x128xbf16>, vector<16x128xf32> -> vector<16x128xf32>
    %32 = vector.broadcast %30 : vector<1x128xf32> to vector<16x128xf32>
    %33 = arith.addf %31, %32 : vector<16x128xf32>
    %c0_21 = arith.constant 0 : index
    %c0_22 = arith.constant 0 : index
    %34 = vector.load %arg8[%c0_21, %c0_22] : memref<16x128xf32, #tpu.memory_space<vmem>>, vector<16x128xf32>
    tpu.vector_store %arg8[%c0_21, %c0_22], %33 {strides = array<i32>} : memref<16x128xf32, #tpu.memory_space<vmem>>, vector<16x128xf32>,
    return
  }
  func.func @transform_0(%arg0: i32) -> (i32, i32) {
    %c0_i32 = arith.constant 0 : i32
    %c0_i32_0 = arith.constant 0 : i32
    return %arg0, %c0_i32 : i32, i32
  }
  func.func @transform_1(%arg0: i32) -> (i32, i32) {
    %c0_i32 = arith.constant 0 : i32
    %c0_i32_0 = arith.constant 0 : i32
    %c0_i32_1 = arith.constant 0 : i32
    return %c0_i32, %c0_i32_0 : i32, i32
  }
  func.func @transform_2(%arg0: i32) -> (i32, i32) {
    %c0_i32 = arith.constant 0 : i32
    %c0_i32_0 = arith.constant 0 : i32
    %c0_i32_1 = arith.constant 0 : i32
    return %c0_i32, %c0_i32_0 : i32, i32
  }
  func.func @transform_3(%arg0: i32) -> (i32, i32) {
    %c0_i32 = arith.constant 0 : i32
    %c0_i32_0 = arith.constant 0 : i32
    %c0_i32_1 = arith.constant 0 : i32
    return %c0_i32, %c0_i32_0 : i32, i32
  }
  func.func @transform_4(%arg0: i32) -> (i32, i32) {
    %c0_i32 = arith.constant 0 : i32
    %c0_i32_0 = arith.constant 0 : i32
    %c0_i32_1 = arith.constant 0 : i32
    return %c0_i32, %c0_i32_0 : i32, i32
  }
  func.func @transform_5(%arg0: i32) -> (i32, i32) {
    %c0_i32 = arith.constant 0 : i32
    %c0_i32_0 = arith.constant 0 : i32
    %c0_i32_1 = arith.constant 0 : i32
    return %c0_i32, %c0_i32_0 : i32, i32
  }
  func.func @transform_6(%arg0: i32) -> (i32, i32) {
    %c0_i32 = arith.constant 0 : i32
    %c0_i32_0 = arith.constant 0 : i32
    %c0_i32_1 = arith.constant 0 : i32
    return %c0_i32, %c0_i32_0 : i32, i32
  }
  func.func @transform_7(%arg0: i32) -> (i32, i32) {
    %c0_i32 = arith.constant 0 : i32
    %c0_i32_0 = arith.constant 0 : i32
    return %arg0, %c0_i32 : i32, i32
  }
}

module attributes {stable_mosaic.version = 11 : i64} {
  func.func @_fused_mlp_kernel(%arg0: i32, %arg1: memref<16x128xbf16, #tpu.memory_space<vmem>>, %arg2: memref<128x128xbf16, #tpu.memory_space<vmem>>, %arg3: memref<1x128xf32, #tpu.memory_space<vmem>>, %arg4: memref<128x128xbf16, #tpu.memory_space<vmem>>, %arg5: memref<1x128xf32, #tpu.memory_space<vmem>>, %arg6: memref<128x128xbf16, #tpu.memory_space<vmem>>, %arg7: memref<1x128xf32, #tpu.memory_space<vmem>>, %arg8: memref<16x128xf32, #tpu.memory_space<vmem>>) attributes {dimension_semantics = [#tpu.dimension_semantics<parallel>], iteration_bounds = array<i64: 1>, scalar_prefetch = 0 : i64, scratch_operands = 0 : i64, tpu.core_type = #tpu.core_type<tc>, window_params = [{transform_indices = @transform_0, window_bounds = array<i64: 16, 128>}, {pipeline_mode = #tpu.pipeline_mode<synchronous>, transform_indices = @transform_1, window_bounds = array<i64: 128, 128>}, {pipeline_mode = #tpu.pipeline_mode<synchronous>, transform_indices = @transform_2, window_bounds = array<i64: 1, 128>}, {pipeline_mode = #tpu.pipeline_mode<synchronous>, transform_indices = @transform_3, window_bounds = array<i64: 128, 128>}, {pipeline_mode = #tpu.pipeline_mode<synchronous>, transform_indices = @transform_4, window_bounds = array<i64: 1, 128>}, {pipeline_mode = #tpu.pipeline_mode<synchronous>, transform_indices = @transform_5, window_bounds = array<i64: 128, 128>}, {pipeline_mode = #tpu.pipeline_mode<synchronous>, transform_indices = @transform_6, window_bounds = array<i64: 1, 128>}, {transform_indices = @transform_7, window_bounds = array<i64: 16, 128>}]} {
    %c0 = arith.constant 0 : index
    %c0_0 = arith.constant 0 : index
    %0 = vector.load %arg1[%c0, %c0_0] : memref<16x128xbf16, #tpu.memory_space<vmem>>, vector<16x128xbf16>
    %c0_1 = arith.constant 0 : index
    %c0_2 = arith.constant 0 : index
    %1 = vector.load %arg2[%c0_1, %c0_2] : memref<128x128xbf16, #tpu.memory_space<vmem>>, vector<128x128xbf16>
    %c0_3 = arith.constant 0 : index
    %c0_4 = arith.constant 0 : index
    %2 = vector.load %arg3[%c0_3, %c0_4] : memref<1x128xf32, #tpu.memory_space<vmem>>, vector<1x128xf32>
    %cst = arith.constant dense<0.000000e+00> : vector<16x128xf32>
    %3 = tpu.matmul %0, %1, %cst {dimension_numbers = #tpu.dot_dimension_numbers<[1], [0], [0], [1], [0, 0, 1, 1], [], []>} : vector<16x128xbf16>, vector<128x128xbf16>, vector<16x128xf32> -> vector<16x128xf32>
    %4 = vector.broadcast %2 : vector<1x128xf32> to vector<16x128xf32>
    %5 = arith.addf %3, %4 : vector<16x128xf32>
    %cst_5 = arith.constant 5.000000e-01 : f32
    %6 = vector.broadcast %cst_5 : f32 to vector<16x128xf32>
    %7 = arith.mulf %6, %5 : vector<16x128xf32>
    %cst_6 = arith.constant 0.707106769 : f32
    %8 = vector.broadcast %cst_6 : f32 to vector<16x128xf32>
    %9 = arith.mulf %5, %8 : vector<16x128xf32>
    %10 = math.erf %9 : vector<16x128xf32>
    %cst_7 = arith.constant 1.000000e+00 : f32
    %11 = vector.broadcast %cst_7 : f32 to vector<16x128xf32>
    %12 = arith.addf %11, %10 : vector<16x128xf32>
    %13 = arith.mulf %7, %12 : vector<16x128xf32>
    %14 = arith.truncf %13 : vector<16x128xf32> to vector<16x128xbf16>
    %c0_8 = arith.constant 0 : index
    %c0_9 = arith.constant 0 : index
    %15 = vector.load %arg4[%c0_8, %c0_9] : memref<128x128xbf16, #tpu.memory_space<vmem>>, vector<128x128xbf16>
    %c0_10 = arith.constant 0 : index
    %c0_11 = arith.constant 0 : index
    %16 = vector.load %arg5[%c0_10, %c0_11] : memref<1x128xf32, #tpu.memory_space<vmem>>, vector<1x128xf32>
    %cst_12 = arith.constant dense<0.000000e+00> : vector<16x128xf32>
    %17 = tpu.matmul %14, %15, %cst_12 {dimension_numbers = #tpu.dot_dimension_numbers<[1], [0], [0], [1], [0, 0, 1, 1], [], []>} : vector<16x128xbf16>, vector<128x128xbf16>, vector<16x128xf32> -> vector<16x128xf32>
    %18 = vector.broadcast %16 : vector<1x128xf32> to vector<16x128xf32>
    %19 = arith.addf %17, %18 : vector<16x128xf32>
    %cst_13 = arith.constant 5.000000e-01 : f32
    %20 = vector.broadcast %cst_13 : f32 to vector<16x128xf32>
    %21 = arith.mulf %20, %19 : vector<16x128xf32>
    %cst_14 = arith.constant 0.707106769 : f32
    %22 = vector.broadcast %cst_14 : f32 to vector<16x128xf32>
    %23 = arith.mulf %19, %22 : vector<16x128xf32>
    %24 = math.erf %23 : vector<16x128xf32>
    %cst_15 = arith.constant 1.000000e+00 : f32
    %25 = vector.broadcast %cst_15 : f32 to vector<16x128xf32>
    %26 = arith.addf %25, %24 : vector<16x128xf32>
    %27 = arith.mulf %21, %26 : vector<16x128xf32>
    %28 = arith.truncf %27 : vector<16x128xf32> to vector<16x128xbf16>
    %c0_16 = arith.constant 0 : index
    %c0_17 = arith.constant 0 : index
    %29 = vector.load %arg6[%c0_16, %c0_17] : memref<128x128xbf16, #tpu.memory_space<vmem>>, vector<128x128xbf16>
    %c0_18 = arith.constant 0 : index
    %c0_19 = arith.constant 0 : index
    %30 = vector.load %arg7[%c0_18, %c0_19] : memref<1x128xf32, #tpu.memory_space<vmem>>, vector<1x128xf32>
    %cst_20 = arith.constant dense<0.000000e+00> : vector<16x128xf32>
    %31 = tpu.matmul %28, %29, %cst_20 {dimension_numbers = #tpu.dot_dimension_numbers<[1], [0], [0], [1], [0, 0, 1, 1], [], []>} : vector<16x128xbf16>, vector<128x128xbf16>, vector<16x128xf32> -> vector<16x128xf32>
    %32 = vector.broadcast %30 : vector<1x128xf32> to vector<16x128xf32>
    %33 = arith.addf %31, %32 : vector<16x128xf32>
    %c0_21 = arith.constant 0 : index
    %c0_22 = arith.constant 0 : index
    %34 = vector.load %arg8[%c0_21, %c0_22] : memref<16x128xf32, #tpu.memory_space<vmem>>, vector<16x128xf32>
    tpu.vector_store %arg8[%c0_21, %c0_22], %33 {strides = array<i32>} : memref<16x128xf32, #tpu.memory_space<vmem>>, vector<16x128xf32>,
    return
  }
  func.func @transform_0(%arg0: i32) -> (i32, i32) {
    %c0_i32 = arith.constant 0 : i32
    %c0_i32_0 = arith.constant 0 : i32
    return %arg0, %c0_i32 : i32, i32
  }
  func.func @transform_1(%arg0: i32) -> (i32, i32) {
    %c0_i32 = arith.constant 0 : i32
    %c0_i32_0 = arith.constant 0 : i32
    %c0_i32_1 = arith.constant 0 : i32
    return %c0_i32, %c0_i32_0 : i32, i32
  }
  func.func @transform_2(%arg0: i32) -> (i32, i32) {
    %c0_i32 = arith.constant 0 : i32
    %c0_i32_0 = arith.constant 0 : i32
    %c0_i32_1 = arith.constant 0 : i32
    return %c0_i32, %c0_i32_0 : i32, i32
  }
  func.func @transform_3(%arg0: i32) -> (i32, i32) {
    %c0_i32 = arith.constant 0 : i32
    %c0_i32_0 = arith.constant 0 : i32
    %c0_i32_1 = arith.constant 0 : i32
    return %c0_i32, %c0_i32_0 : i32, i32
  }
  func.func @transform_4(%arg0: i32) -> (i32, i32) {
    %c0_i32 = arith.constant 0 : i32
    %c0_i32_0 = arith.constant 0 : i32
    %c0_i32_1 = arith.constant 0 : i32
    return %c0_i32, %c0_i32_0 : i32, i32
  }
  func.func @transform_5(%arg0: i32) -> (i32, i32) {
    %c0_i32 = arith.constant 0 : i32
    %c0_i32_0 = arith.constant 0 : i32
    %c0_i32_1 = arith.constant 0 : i32
    return %c0_i32, %c0_i32_0 : i32, i32
  }
  func.func @transform_6(%arg0: i32) -> (i32, i32) {
    %c0_i32 = arith.constant 0 : i32
    %c0_i32_0 = arith.constant 0 : i32
    %c0_i32_1 = arith.constant 0 : i32
    return %c0_i32, %c0_i32_0 : i32, i32
  }
  func.func @transform_7(%arg0: i32) -> (i32, i32) {
    %c0_i32 = arith.constant 0 : i32
    %c0_i32_0 = arith.constant 0 : i32
    return %arg0, %c0_i32 : i32, i32
  }
}

module attributes {stable_mosaic.version = 11 : i64} {
  func.func @_linear_fullk_kernel(%arg0: i32, %arg1: i32, %arg2: memref<16x128xbf16, #tpu.memory_space<vmem>>, %arg3: memref<128x128xbf16, #tpu.memory_space<vmem>>, %arg4: memref<1x128xf32, #tpu.memory_space<vmem>>, %arg5: memref<16x128xbf16, #tpu.memory_space<vmem>>) attributes {dimension_semantics = [#tpu.dimension_semantics<parallel>, #tpu.dimension_semantics<parallel>], iteration_bounds = array<i64: 1, 1>, scalar_prefetch = 0 : i64, scratch_operands = 0 : i64, tpu.core_type = #tpu.core_type<tc>, window_params = [{transform_indices = @transform_0, window_bounds = array<i64: 16, 128>}, {transform_indices = @transform_1, window_bounds = array<i64: 128, 128>}, {transform_indices = @transform_2, window_bounds = array<i64: 1, 128>}, {transform_indices = @transform_3, window_bounds = array<i64: 16, 128>}]} {
    %c0 = arith.constant 0 : index
    %c0_0 = arith.constant 0 : index
    %0 = vector.load %arg2[%c0, %c0_0] : memref<16x128xbf16, #tpu.memory_space<vmem>>, vector<16x128xbf16>
    %c0_1 = arith.constant 0 : index
    %c0_2 = arith.constant 0 : index
    %1 = vector.load %arg3[%c0_1, %c0_2] : memref<128x128xbf16, #tpu.memory_space<vmem>>, vector<128x128xbf16>
    %cst = arith.constant dense<0.000000e+00> : vector<16x128xf32>
    %2 = tpu.matmul %0, %1, %cst {dimension_numbers = #tpu.dot_dimension_numbers<[1], [0], [0], [1], [0, 0, 1, 1], [], []>} : vector<16x128xbf16>, vector<128x128xbf16>, vector<16x128xf32> -> vector<16x128xf32>
    %c0_3 = arith.constant 0 : index
    %c0_4 = arith.constant 0 : index
    %3 = vector.load %arg4[%c0_3, %c0_4] : memref<1x128xf32, #tpu.memory_space<vmem>>, vector<1x128xf32>
    %4 = vector.broadcast %3 : vector<1x128xf32> to vector<16x128xf32>
    %5 = arith.addf %2, %4 : vector<16x128xf32>
    %cst_5 = arith.constant 5.000000e-01 : f32
    %6 = vector.broadcast %cst_5 : f32 to vector<16x128xf32>
    %7 = arith.mulf %6, %5 : vector<16x128xf32>
    %cst_6 = arith.constant 0.707106769 : f32
    %8 = vector.broadcast %cst_6 : f32 to vector<16x128xf32>
    %9 = arith.mulf %5, %8 : vector<16x128xf32>
    %10 = math.erf %9 : vector<16x128xf32>
    %cst_7 = arith.constant 1.000000e+00 : f32
    %11 = vector.broadcast %cst_7 : f32 to vector<16x128xf32>
    %12 = arith.addf %11, %10 : vector<16x128xf32>
    %13 = arith.mulf %7, %12 : vector<16x128xf32>
    %14 = arith.truncf %13 : vector<16x128xf32> to vector<16x128xbf16>
    %c0_8 = arith.constant 0 : index
    %c0_9 = arith.constant 0 : index
    %15 = vector.load %arg5[%c0_8, %c0_9] : memref<16x128xbf16, #tpu.memory_space<vmem>>, vector<16x128xbf16>
    tpu.vector_store %arg5[%c0_8, %c0_9], %14 {strides = array<i32>} : memref<16x128xbf16, #tpu.memory_space<vmem>>, vector<16x128xbf16>,
    return
  }
  func.func @transform_0(%arg0: i32, %arg1: i32) -> (i32, i32) {
    %c0_i32 = arith.constant 0 : i32
    %c0_i32_0 = arith.constant 0 : i32
    return %arg0, %c0_i32 : i32, i32
  }
  func.func @transform_1(%arg0: i32, %arg1: i32) -> (i32, i32) {
    %c0_i32 = arith.constant 0 : i32
    %c0_i32_0 = arith.constant 0 : i32
    return %c0_i32, %arg1 : i32, i32
  }
  func.func @transform_2(%arg0: i32, %arg1: i32) -> (i32, i32) {
    %c0_i32 = arith.constant 0 : i32
    %c0_i32_0 = arith.constant 0 : i32
    return %c0_i32, %arg1 : i32, i32
  }
  func.func @transform_3(%arg0: i32, %arg1: i32) -> (i32, i32) {
    %c0_i32 = arith.constant 0 : i32
    return %arg0, %arg1 : i32, i32
  }
}

</mosaic_0001>

<bundles_post_ra>
// kernel: tpu_custom_call.1
= control target key start
LH: loop header
LB: loop body
LE: loop exit
PB: predicated region body
PF: predicated region fallthrough
CT: control target
= control target key end

     0   :  { %12 = vsyncpa [#allocation3], 0  ;;  %s923_s0 = inlined_call_operand.hbm [shape: bf16[16,128], index: 0, kind: input, shape index: {}]   ;;  %s924_s1 = inlined_call_operand.hbm [shape: bf16[128,128], index: 1, kind: input, shape index: {}]   ;;  %s925_s2 = inlined_call_operand.vmem [shape: f32[1,128], index: 2, kind: input, shape index: {}]   ;;  %s926_s3 = inlined_call_operand.hbm [shape: bf16[128,128], index: 3, kind: input, shape index: {}]   ;;  %s927_s4 = inlined_call_operand.vmem [shape: f32[1,128], index: 4, kind: input, shape index: {}]   ;;  %s928_s5 = inlined_call_operand.hbm [shape: bf16[128,128], index: 5, kind: input, shape index: {}]   ;;  %s929_s6 = inlined_call_operand.vmem [shape: f32[1,128], index: 6, kind: input, shape index: {}]   ;;  %s930_s7 = inlined_call_operand.hbm [shape: f32[16,128], index: 7, kind: output, shape index: {}]  }
   0x1   :  { %13 = vsyncpa [#allocation6], 0 }
   0x2   :  { %14 = vsyncpa [#allocation9], 0 }
   0x3   :  { %15 = vsyncpa [#allocation4], 0  ;;  %s747_s24 = smov [#allocation5]   ;;  %s748_s26 = smov [#allocation2]  }
   0x4   :  { %s33_s25 = sshll.u32 %s747_s24, 4  ;;  %s21_s27 = sshll.u32 %s748_s26, 4  ;;  %s34_s25 = int_to_ptr.vmem [resolvable:$true] %s33_s25  ;;  %s798_s27 = int_to_ptr.vmem [resolvable:$true] %s21_s27 }
   0x5   :  { %s629_s30 = scalar_lea.hbm %s924_s1, 1024 }
   0x6   :  { %p630_p0 = scmp.ne.s32.totalorder %s924_s1, %s629_s30  ;;  %p633_p1 = scmp.lt.u32.totalorder %s629_s30, %s924_s1 }
   0x8   :  { %p635_p2 = pnand %p633_p1, %p630_p0 }
   0xa   :  { %638 = shalt.err (!%p635_p2)
}
   0xb   :  { %s639_s12 = scalar_lea.vmem %s34_s25, 1024  ;;  %p644_p4 = scmp.lt.s32.totalorder %s34_s25, %s34_s25 }
   0xc   :  { %p640_p3 = scmp.ne.s32.totalorder %s34_s25, %s639_s12  ;;  %p645_p5 = scmp.lt.s32.totalorder %s639_s12, %s639_s12 }
   0xe   :  { %p646_p6 = por %p645_p5, %p644_p4 }
  0x10   :  { %p647_p7 = pnand %p646_p6, %p640_p3 }
  0x12   :  { %650 = shalt.err (!%p647_p7)
}
  0x13   :  { %s749_s13 = smov 64   ;;  %s750_s14 = smov 4  }
  0x14   :  { %39 = dma.hbm_to_vmem [thread:$0]  %s924_s1, 1024, %s34_s25, [#allocation6], %s749_s13, %s749_s13, %s750_s14  }
  0x15   :  { %s651_s19 = scalar_lea.hbm %s923_s0, 128 }
  0x16   :  { %p652_p8 = scmp.ne.s32.totalorder %s923_s0, %s651_s19  ;;  %p655_p9 = scmp.lt.u32.totalorder %s651_s19, %s923_s0 }
  0x18   :  { %p657_p10 = pnand %p655_p9, %p652_p8 }
  0x1a   :  { %660 = shalt.err (!%p657_p10)
}
  0x1b   :  { %s661_s24 = scalar_lea.vmem %s798_s27, 128  ;;  %p666_p12 = scmp.lt.s32.totalorder %s798_s27, %s798_s27 }
  0x1c   :  { %p662_p11 = scmp.ne.s32.totalorder %s798_s27, %s661_s24  ;;  %p667_p13 = scmp.lt.s32.totalorder %s661_s24, %s661_s24 }
  0x1e   :  { %p668_p0 = por %p667_p13, %p666_p12 }
  0x20   :  { %p669_p1 = pnand %p668_p0, %p662_p11 }
  0x22   :  { %672 = shalt.err (!%p669_p1)
}
  0x23   :  { %27 = dma.hbm_to_vmem [thread:$0]  %s923_s0, 128, %s798_s27, [#allocation3], %s749_s13, %s749_s13, %s750_s14  }
  0x24   :  { %s751_s26 = smov [#allocation7]   ;;  %s752_s29 = smov [#allocation8]  }
  0x25   :  { %s47_s28 = sshll.u32 %s751_s26, 4  ;;  %s61_s30 = sshll.u32 %s752_s29, 4  ;;  %s48_s28 = int_to_ptr.vmem [resolvable:$true] %s47_s28  ;;  %s835_s30 = int_to_ptr.vmem [resolvable:$true] %s61_s30 }
  0x26   :  { %s673_s10 = scalar_lea.hbm %s926_s3, 1024 }
  0x27   :  { %p674_p2 = scmp.ne.s32.totalorder %s926_s3, %s673_s10  ;;  %p677_p3 = scmp.lt.u32.totalorder %s673_s10, %s926_s3 }
  0x29   :  { %p679_p4 = pnand %p677_p3, %p674_p2 }
  0x2b   :  { %682 = shalt.err (!%p679_p4)
}
  0x2c   :  { %s683_s0 = scalar_lea.vmem %s48_s28, 1024  ;;  %p688_p6 = scmp.lt.s32.totalorder %s48_s28, %s48_s28 }
  0x2d   :  { %p684_p5 = scmp.ne.s32.totalorder %s48_s28, %s683_s0  ;;  %p689_p7 = scmp.lt.s32.totalorder %s683_s0, %s683_s0 }
  0x2f   :  { %p690_p8 = por %p689_p7, %p688_p6 }
  0x31   :  { %p691_p9 = pnand %p690_p8, %p684_p5 }
  0x33   :  { %694 = shalt.err (!%p691_p9)
}
  0x34   :  { %53 = dma.hbm_to_vmem [thread:$0]  %s926_s3, 1024, %s48_s28, [#allocation6], %s749_s13, %s749_s13, %s750_s14  }
  0x35   :  { %s695_s20 = scalar_lea.hbm %s928_s5, 1024 }
  0x36   :  { %p696_p10 = scmp.ne.s32.totalorder %s928_s5, %s695_s20  ;;  %p699_p11 = scmp.lt.u32.totalorder %s695_s20, %s928_s5 }
  0x38   :  { %p701_p12 = pnand %p699_p11, %p696_p10 }
  0x3a   :  { %704 = shalt.err (!%p701_p12)
}
  0x3b   :  { %s705_s1 = scalar_lea.vmem %s835_s30, 1024  ;;  %p710_p0 = scmp.lt.s32.totalorder %s835_s30, %s835_s30 }
  0x3c   :  { %p706_p13 = scmp.ne.s32.totalorder %s835_s30, %s705_s1  ;;  %p711_p1 = scmp.lt.s32.totalorder %s705_s1, %s705_s1 }
  0x3e   :  { %p712_p2 = por %p711_p1, %p710_p0 }
  0x40   :  { %p713_p3 = pnand %p712_p2, %p706_p13 }
  0x42   :  { %716 = shalt.err (!%p713_p3)
}
  0x43   :  { %67 = dma.hbm_to_vmem [thread:$0]  %s928_s5, 1024, %s835_s30, [#allocation9], %s749_s13, %s749_s13, %s750_s14  }
  0x44   :  { %739 = dma.done.wait [#allocation3], 128  }
  0x45   :  { %740 = vsyncadd [#allocation3], 4294967168 }
  0x46   :  { %741 = dma.done.wait [#allocation6], 2048  }
  0x47   :  { %742 = vsyncadd [#allocation6], 4294965248 }
  0x48   :  { %743 = dma.done.wait [#allocation9], 1024  }
  0x49   :  { %744 = vsyncadd [#allocation9], 4294966272  ;;  %v753_v0 = vmov 0.0   ;;  %vm754_vm0 = vmmov 0   ;;  %v596_v1 = vld [vmem:[#allocation5] sm:$0xff]   ;;  %v597_v2 = vld [vmem:[#allocation5 + $0x8] sm:$0xff]  }
  0x4a   :  { %525 = vmatprep.subr.bf16.mxu0 %v753_v0  ;;  %541 = vmatprep.mubr.msk.bf16.mxu0 %vm754_vm0, %v753_v0  ;;  %v598_v3 = vld [vmem:[#allocation5 + $0x10] sm:$0xff]   ;;  %v605_v4 = vld [vmem:[#allocation7] sm:$0xff]   ;;  %v599_v5 = vld [vmem:[#allocation5 + $0x18] sm:$0xff]   ;;  %s755_s28 = smov [#allocation10]  }
  0x4b   :  { %545 = vmatprep.subr.bf16.mxu1 %v753_v0  ;;  %561 = vmatprep.mubr.msk.bf16.mxu1 %vm754_vm0, %v753_v0  ;;  %v606_v6 = vld [vmem:[#allocation7 + $0x8] sm:$0xff]   ;;  %v600_v7 = vld [vmem:[#allocation5 + $0x20] sm:$0xff]   ;;  %v602_v9 = vld [vmem:[#allocation5 + $0x30] sm:$0xff]   ;;  %s456_s29 = sshll.u32 %s755_s28, 4  ;;  %s457_s29 = int_to_ptr.vmem [resolvable:$true] %s456_s29 }
  0x4c   :  { %526 = vmatpush3.bf16.msra.mxu0 %v596_v1  ;;  %546 = vmatpush3.bf16.msra.mxu1 %v605_v4  ;;  %v601_v8 = vld [vmem:[#allocation5 + $0x28] sm:$0xff]   ;;  %v603_v10 = vld [vmem:[#allocation5 + $0x38] sm:$0xff]   ;;  %v607_v12 = vld [vmem:[#allocation7 + $0x10] sm:$0xff]   ;;  %s717_s30 = scalar_lea.vmem %s457_s29, 256  ;;  %p722_p5 = scmp.lt.s32.totalorder %s457_s29, %s457_s29 }
  0x4d   :  { %527 = vmatprep.subr.bf16.mxu0 %v753_v0  ;;  %547 = vmatprep.subr.bf16.mxu1 %v753_v0  ;;  %v604_v11 = vld [vmem:[#allocation2] sm:$0xff]   ;;  %v609_v14 = vld [vmem:[#allocation7 + $0x20] sm:$0xff]   ;;  %v610_v15 = vld [vmem:[#allocation7 + $0x28] sm:$0xff]   ;;  %p718_p4 = scmp.ne.s32.totalorder %s457_s29, %s717_s30  ;;  %p723_p6 = scmp.lt.s32.totalorder %s717_s30, %s717_s30 }
  0x4e   :  { %v608_v13 = vld [vmem:[#allocation7 + $0x18] sm:$0xff]   ;;  %v611_v16 = vld [vmem:[#allocation7 + $0x30] sm:$0xff]   ;;  %v613_v18 = vld [vmem:[#allocation8] sm:$0xff]  }
  0x4f   :  { %v612_v17 = vld [vmem:[#allocation7 + $0x38] sm:$0xff]   ;;  %v614_v19 = vld [vmem:[#allocation8 + $0x8] sm:$0xff]   ;;  %v615_v38 = vld [vmem:[#allocation8 + $0x10] sm:$0xff]   ;;  %p724_p7 = por %p723_p6, %p722_p5 }
  0x50   :  { %528 = vmatpush3.bf16.msra.mxu0 %v597_v2  ;;  %548 = vmatpush3.bf16.msra.mxu1 %v606_v6  ;;  %v470_v20 = vld [vmem:[%s925_s2] ss:$0 sm:$0xff]  ;;  %v617_v40 = vld [vmem:[#allocation8 + $0x20] sm:$0xff]   ;;  %v618_v41 = vld [vmem:[#allocation8 + $0x28] sm:$0xff]  }
  0x51   :  { %529 = vmatprep.subr.bf16.mxu0 %v753_v0  ;;  %549 = vmatprep.subr.bf16.mxu1 %v753_v0  ;;  %v616_v39 = vld [vmem:[#allocation8 + $0x18] sm:$0xff]   ;;  %v619_v42 = vld [vmem:[#allocation8 + $0x30] sm:$0xff]   ;;  %p725_p8 = pnand %p724_p7, %p718_p4 }
  0x52   :  { %v620_v43 = vld [vmem:[#allocation8 + $0x38] sm:$0xff]  }
  0x53   :  { %v480_v44 = vld [vmem:[%s927_s4] ss:$0 sm:$0xff] }
  0x54   :  { %530 = vmatpush3.bf16.msra.mxu0 %v598_v3  ;;  %550 = vmatpush3.bf16.msra.mxu1 %v607_v12  ;;  %v489_v62 = vld [vmem:[%s929_s6] ss:$0 sm:$0xff] }
  0x55   :  { %531 = vmatprep.subr.bf16.mxu0 %v753_v0  ;;  %551 = vmatprep.subr.bf16.mxu1 %v753_v0 }
  0x58   :  { %532 = vmatpush3.bf16.msra.mxu0 %v599_v5  ;;  %552 = vmatpush3.bf16.msra.mxu1 %v608_v13 }
  0x59   :  { %533 = vmatprep.subr.bf16.mxu0 %v753_v0  ;;  %553 = vmatprep.subr.bf16.mxu1 %v753_v0 }
  0x5c   :  { %534 = vmatpush3.bf16.msra.mxu0 %v600_v7  ;;  %554 = vmatpush3.bf16.msra.mxu1 %v609_v14 }
  0x5d   :  { %535 = vmatprep.subr.bf16.mxu0 %v753_v0  ;;  %555 = vmatprep.subr.bf16.mxu1 %v753_v0 }
  0x60   :  { %536 = vmatpush3.bf16.msra.mxu0 %v601_v8  ;;  %556 = vmatpush3.bf16.msra.mxu1 %v610_v15 }
  0x61   :  { %537 = vmatprep.subr.bf16.mxu0 %v753_v0  ;;  %557 = vmatprep.subr.bf16.mxu1 %v753_v0 }
  0x64   :  { %538 = vmatpush3.bf16.msra.mxu0 %v602_v9  ;;  %558 = vmatpush3.bf16.msra.mxu1 %v611_v16 }
  0x65   :  { %539 = vmatprep.subr.bf16.mxu0 %v753_v0  ;;  %559 = vmatprep.subr.bf16.mxu1 %v753_v0 }
  0x68   :  { %540 = vmatpush3.bf16.msra.mxu0 %v603_v10  ;;  %560 = vmatpush3.bf16.msra.mxu1 %v612_v17 }
  0x69   :  { %565 = vmatprep.subr.bf16.mxu0 %v753_v0 }
  0x6b   :  { %542 = vmatmul.mubr.bf16.vlgmr.msra.gmra.mrb[0].mxu0 %v604_v11 }
  0x6c   :  { %581 = vmatprep.mubr.msk.bf16.mxu0 %vm754_vm0, %v753_v0  ;;  %566 = vmatpush3.bf16.msra.mxu0 %v613_v18 }
  0x6d   :  { %567 = vmatprep.subr.bf16.mxu0 %v753_v0 }
  0x70   :  { %568 = vmatpush3.bf16.msra.mxu0 %v614_v19 }
  0x71   :  { %569 = vmatprep.subr.bf16.mxu0 %v753_v0 }
  0x74   :  { %570 = vmatpush3.bf16.msra.mxu0 %v615_v38 }
  0x75   :  { %571 = vmatprep.subr.bf16.mxu0 %v753_v0 }
  0x78   :  { %572 = vmatpush3.bf16.msra.mxu0 %v616_v39 }
  0x79   :  { %573 = vmatprep.subr.bf16.mxu0 %v753_v0 }
  0x7c   :  { %574 = vmatpush3.bf16.msra.mxu0 %v617_v40 }
  0x7d   :  { %575 = vmatprep.subr.bf16.mxu0 %v753_v0 }
  0x80   :  { %576 = vmatpush3.bf16.msra.mxu0 %v618_v41 }
  0x81   :  { %577 = vmatprep.subr.bf16.mxu0 %v753_v0 }
  0x84   :  { %578 = vmatpush3.bf16.msra.mxu0 %v619_v42 }
  0x85   :  { %579 = vmatprep.subr.bf16.mxu0 %v753_v0 }
  0x88   :  { %580 = vmatpush3.bf16.msra.mxu0 %v620_v43 }
 0x13e   :  { %v196_v21 = vpop.f32.mrb[0].mxu0 }
 0x13f   :  { %v197_v22 = vadd.f32 %v470_v20, %v196_v21  ;;  %v543_v23 = vpop.f32.mrb[1].mxu0 }
 0x140   :  { %v199_v24 = vpop.f32.mrb[2].mxu0 }
 0x141   :  { %v205_v25 = vmul.f32 0.70710677, %v197_v22  ;;  %v200_v26 = vadd.f32 %v470_v20, %v199_v24  ;;  %v544_v27 = vpop.f32.mrb[3].mxu0  ;;  %v203_v32 = vmul.f32 0.5, %v197_v22 }
 0x143   :  { %621 = verf.f32 %v205_v25  ;;  %v206_v28 = vmul.f32 0.70710677, %v200_v26  ;;  %v204_v33 = vmul.f32 0.5, %v200_v26 }
 0x145   :  { %623 = verf.f32 %v206_v28 }
 0x14d   :  { %v622_v29 = vpop.eup %621 }
 0x14e   :  { %v209_v30 = vadd.f32 1.0, %v622_v29 }
 0x14f   :  { %v624_v31 = vpop.eup %623 }
 0x150   :  { %v210_v34 = vadd.f32 1.0, %v624_v31  ;;  %v211_v35 = vmul.f32 %v209_v30, %v203_v32 }
 0x152   :  { %v212_v36 = vmul.f32 %v210_v34, %v204_v33 }
 0x154   :  { %v213_v37 = vpack.c.bf16 %v212_v36, %v211_v35 }
 0x156   :  { %562 = vmatmul.mubr.bf16.vlgmr.msra.gmra.mrb[0].mxu1 %v213_v37 }
 0x229   :  { %v319_v45 = vpop.f32.mrb[0].mxu1 }
 0x22a   :  { %v320_v46 = vadd.f32 %v480_v44, %v319_v45  ;;  %v563_v47 = vpop.f32.mrb[1].mxu1 }
 0x22b   :  { %v322_v48 = vpop.f32.mrb[2].mxu1 }
 0x22c   :  { %v328_v49 = vmul.f32 0.70710677, %v320_v46  ;;  %v323_v50 = vadd.f32 %v480_v44, %v322_v48  ;;  %v564_v51 = vpop.f32.mrb[3].mxu1  ;;  %v326_v56 = vmul.f32 0.5, %v320_v46 }
 0x22e   :  { %625 = verf.f32 %v328_v49  ;;  %v329_v52 = vmul.f32 0.70710677, %v323_v50  ;;  %v327_v57 = vmul.f32 0.5, %v323_v50 }
 0x230   :  { %627 = verf.f32 %v329_v52 }
 0x238   :  { %v626_v53 = vpop.eup %625 }
 0x239   :  { %v332_v54 = vadd.f32 1.0, %v626_v53 }
 0x23a   :  { %v628_v55 = vpop.eup %627 }
 0x23b   :  { %v333_v58 = vadd.f32 1.0, %v628_v55  ;;  %v334_v59 = vmul.f32 %v332_v54, %v326_v56 }
 0x23d   :  { %v335_v60 = vmul.f32 %v333_v58, %v327_v57 }
 0x23f   :  { %v336_v61 = vpack.c.bf16 %v335_v60, %v334_v59 }
 0x241   :  { %582 = vmatmul.mubr.bf16.vlgmr.msra.gmra.mrb[4].mxu0 %v336_v61 }
 0x314   :  { %v442_v63 = vpop.f32.mrb[4].mxu0 }
 0x315   :  { %v443_v0 = vadd.f32 %v489_v62, %v442_v63  ;;  %v583_v1 = vpop.f32.mrb[5].mxu0 }
 0x316   :  { %v445_v2 = vpop.f32.mrb[6].mxu0 }
 0x317   :  { %449 = vst [vmem:[#allocation10] sm:$0xff] %v443_v0  ;;  %v446_v3 = vadd.f32 %v489_v62, %v445_v2  ;;  %v584_v4 = vpop.f32.mrb[7].mxu0 }
 0x319   :  { %450 = vst [vmem:[#allocation10 + $0x8] sm:$0xff] %v446_v3 }
 0x31a   :  { %728 = shalt.err (!%p725_p8)
}
 0x31b   :  { %s729_s9 = scalar_lea.hbm %s930_s7, 256 }
 0x31c   :  { %p730_p9 = scmp.ne.s32.totalorder %s930_s7, %s729_s9  ;;  %p733_p10 = scmp.lt.u32.totalorder %s729_s9, %s930_s7 }
 0x31e   :  { %p735_p11 = pnand %p733_p10, %p730_p9 }
 0x320   :  { %738 = shalt.err (!%p735_p11)
}
 0x321   :  { %s756_s16 = smov 128   ;;  %s757_s0 = smov 8  }
 0x322   :  { %462 = dma.vmem_to_hbm [thread:$0]  %s457_s29, 256, %s930_s7, [#allocation4], %s756_s16, %s756_s16, %s757_s0  }
 0x323   :  { %745 = dma.done.wait [#allocation4], 256  }
 0x324   :  { %746 = vsyncadd [#allocation4], 4294967040 }
 0x325   :  { %466 = vsyncpa [#allocation3], 1 }
 0x326   :  { %467 = vsyncpa [#allocation6], 1 }
 0x327   :  { %468 = vsyncpa [#allocation9], 1 }
 0x328   :  { %469 = vsyncpa [#allocation4], 1 }

// kernel: tpu_custom_call.1
= control target key start
LH: loop header
LB: loop body
LE: loop exit
PB: predicated region body
PF: predicated region fallthrough
CT: control target
= control target key end

     0   :  { %12 = vsyncpa [#allocation3], 0  ;;  %s923_s0 = inlined_call_operand.hbm [shape: bf16[16,128], index: 0, kind: input, shape index: {}]   ;;  %s924_s1 = inlined_call_operand.hbm [shape: bf16[128,128], index: 1, kind: input, shape index: {}]   ;;  %s925_s2 = inlined_call_operand.vmem [shape: f32[1,128], index: 2, kind: input, shape index: {}]   ;;  %s926_s3 = inlined_call_operand.hbm [shape: bf16[128,128], index: 3, kind: input, shape index: {}]   ;;  %s927_s4 = inlined_call_operand.vmem [shape: f32[1,128], index: 4, kind: input, shape index: {}]   ;;  %s928_s5 = inlined_call_operand.hbm [shape: bf16[128,128], index: 5, kind: input, shape index: {}]   ;;  %s929_s6 = inlined_call_operand.vmem [shape: f32[1,128], index: 6, kind: input, shape index: {}]   ;;  %s930_s7 = inlined_call_operand.hbm [shape: f32[16,128], index: 7, kind: output, shape index: {}]  }
   0x1   :  { %13 = vsyncpa [#allocation6], 0 }
   0x2   :  { %14 = vsyncpa [#allocation9], 0 }
   0x3   :  { %15 = vsyncpa [#allocation4], 0  ;;  %s747_s24 = smov [#allocation5]   ;;  %s748_s26 = smov [#allocation2]  }
   0x4   :  { %s33_s25 = sshll.u32 %s747_s24, 4  ;;  %s21_s27 = sshll.u32 %s748_s26, 4  ;;  %s34_s25 = int_to_ptr.vmem [resolvable:$true] %s33_s25  ;;  %s798_s27 = int_to_ptr.vmem [resolvable:$true] %s21_s27 }
   0x5   :  { %s629_s30 = scalar_lea.hbm %s924_s1, 1024 }
   0x6   :  { %p630_p0 = scmp.ne.s32.totalorder %s924_s1, %s629_s30  ;;  %p633_p1 = scmp.lt.u32.totalorder %s629_s30, %s924_s1 }
   0x8   :  { %p635_p2 = pnand %p633_p1, %p630_p0 }
   0xa   :  { %638 = shalt.err (!%p635_p2)
}
   0xb   :  { %s639_s12 = scalar_lea.vmem %s34_s25, 1024  ;;  %p644_p4 = scmp.lt.s32.totalorder %s34_s25, %s34_s25 }
   0xc   :  { %p640_p3 = scmp.ne.s32.totalorder %s34_s25, %s639_s12  ;;  %p645_p5 = scmp.lt.s32.totalorder %s639_s12, %s639_s12 }
   0xe   :  { %p646_p6 = por %p645_p5, %p644_p4 }
  0x10   :  { %p647_p7 = pnand %p646_p6, %p640_p3 }
  0x12   :  { %650 = shalt.err (!%p647_p7)
}
  0x13   :  { %s749_s13 = smov 64   ;;  %s750_s14 = smov 4  }
  0x14   :  { %39 = dma.hbm_to_vmem [thread:$0]  %s924_s1, 1024, %s34_s25, [#allocation6], %s749_s13, %s749_s13, %s750_s14  }
  0x15   :  { %s651_s19 = scalar_lea.hbm %s923_s0, 128 }
  0x16   :  { %p652_p8 = scmp.ne.s32.totalorder %s923_s0, %s651_s19  ;;  %p655_p9 = scmp.lt.u32.totalorder %s651_s19, %s923_s0 }
  0x18   :  { %p657_p10 = pnand %p655_p9, %p652_p8 }
  0x1a   :  { %660 = shalt.err (!%p657_p10)
}
  0x1b   :  { %s661_s24 = scalar_lea.vmem %s798_s27, 128  ;;  %p666_p12 = scmp.lt.s32.totalorder %s798_s27, %s798_s27 }
  0x1c   :  { %p662_p11 = scmp.ne.s32.totalorder %s798_s27, %s661_s24  ;;  %p667_p13 = scmp.lt.s32.totalorder %s661_s24, %s661_s24 }
  0x1e   :  { %p668_p0 = por %p667_p13, %p666_p12 }
  0x20   :  { %p669_p1 = pnand %p668_p0, %p662_p11 }
  0x22   :  { %672 = shalt.err (!%p669_p1)
}
  0x23   :  { %27 = dma.hbm_to_vmem [thread:$0]  %s923_s0, 128, %s798_s27, [#allocation3], %s749_s13, %s749_s13, %s750_s14  }
  0x24   :  { %s751_s26 = smov [#allocation7]   ;;  %s752_s29 = smov [#allocation8]  }
  0x25   :  { %s47_s28 = sshll.u32 %s751_s26, 4  ;;  %s61_s30 = sshll.u32 %s752_s29, 4  ;;  %s48_s28 = int_to_ptr.vmem [resolvable:$true] %s47_s28  ;;  %s835_s30 = int_to_ptr.vmem [resolvable:$true] %s61_s30 }
  0x26   :  { %s673_s10 = scalar_lea.hbm %s926_s3, 1024 }
  0x27   :  { %p674_p2 = scmp.ne.s32.totalorder %s926_s3, %s673_s10  ;;  %p677_p3 = scmp.lt.u32.totalorder %s673_s10, %s926_s3 }
  0x29   :  { %p679_p4 = pnand %p677_p3, %p674_p2 }
  0x2b   :  { %682 = shalt.err (!%p679_p4)
}
  0x2c   :  { %s683_s0 = scalar_lea.vmem %s48_s28, 1024  ;;  %p688_p6 = scmp.lt.s32.totalorder %s48_s28, %s48_s28 }
  0x2d   :  { %p684_p5 = scmp.ne.s32.totalorder %s48_s28, %s683_s0  ;;  %p689_p7 = scmp.lt.s32.totalorder %s683_s0, %s683_s0 }
  0x2f   :  { %p690_p8 = por %p689_p7, %p688_p6 }
  0x31   :  { %p691_p9 = pnand %p690_p8, %p684_p5 }
  0x33   :  { %694 = shalt.err (!%p691_p9)
}
  0x34   :  { %53 = dma.hbm_to_vmem [thread:$0]  %s926_s3, 1024, %s48_s28, [#allocation6], %s749_s13, %s749_s13, %s750_s14  }
  0x35   :  { %s695_s20 = scalar_lea.hbm %s928_s5, 1024 }
  0x36   :  { %p696_p10 = scmp.ne.s32.totalorder %s928_s5, %s695_s20  ;;  %p699_p11 = scmp.lt.u32.totalorder %s695_s20, %s928_s5 }
  0x38   :  { %p701_p12 = pnand %p699_p11, %p696_p10 }
  0x3a   :  { %704 = shalt.err (!%p701_p12)
}
  0x3b   :  { %s705_s1 = scalar_lea.vmem %s835_s30, 1024  ;;  %p710_p0 = scmp.lt.s32.totalorder %s835_s30, %s835_s30 }
  0x3c   :  { %p706_p13 = scmp.ne.s32.totalorder %s835_s30, %s705_s1  ;;  %p711_p1 = scmp.lt.s32.totalorder %s705_s1, %s705_s1 }
  0x3e   :  { %p712_p2 = por %p711_p1, %p710_p0 }
  0x40   :  { %p713_p3 = pnand %p712_p2, %p706_p13 }
  0x42   :  { %716 = shalt.err (!%p713_p3)
}
  0x43   :  { %67 = dma.hbm_to_vmem [thread:$0]  %s928_s5, 1024, %s835_s30, [#allocation9], %s749_s13, %s749_s13, %s750_s14  }
  0x44   :  { %739 = dma.done.wait [#allocation3], 128  }
  0x45   :  { %740 = vsyncadd [#allocation3], 4294967168 }
  0x46   :  { %741 = dma.done.wait [#allocation6], 2048  }
  0x47   :  { %742 = vsyncadd [#allocation6], 4294965248 }
  0x48   :  { %743 = dma.done.wait [#allocation9], 1024  }
  0x49   :  { %744 = vsyncadd [#allocation9], 4294966272  ;;  %v753_v0 = vmov 0.0   ;;  %vm754_vm0 = vmmov 0   ;;  %v596_v1 = vld [vmem:[#allocation5] sm:$0xff]   ;;  %v597_v2 = vld [vmem:[#allocation5 + $0x8] sm:$0xff]  }
  0x4a   :  { %525 = vmatprep.subr.bf16.mxu0 %v753_v0  ;;  %541 = vmatprep.mubr.msk.bf16.mxu0 %vm754_vm0, %v753_v0  ;;  %v598_v3 = vld [vmem:[#allocation5 + $0x10] sm:$0xff]   ;;  %v605_v4 = vld [vmem:[#allocation7] sm:$0xff]   ;;  %v599_v5 = vld [vmem:[#allocation5 + $0x18] sm:$0xff]   ;;  %s755_s28 = smov [#allocation10]  }
  0x4b   :  { %545 = vmatprep.subr.bf16.mxu1 %v753_v0  ;;  %561 = vmatprep.mubr.msk.bf16.mxu1 %vm754_vm0, %v753_v0  ;;  %v606_v6 = vld [vmem:[#allocation7 + $0x8] sm:$0xff]   ;;  %v600_v7 = vld [vmem:[#allocation5 + $0x20] sm:$0xff]   ;;  %v602_v9 = vld [vmem:[#allocation5 + $0x30] sm:$0xff]   ;;  %s456_s29 = sshll.u32 %s755_s28, 4  ;;  %s457_s29 = int_to_ptr.vmem [resolvable:$true] %s456_s29 }
  0x4c   :  { %526 = vmatpush3.bf16.msra.mxu0 %v596_v1  ;;  %546 = vmatpush3.bf16.msra.mxu1 %v605_v4  ;;  %v601_v8 = vld [vmem:[#allocation5 + $0x28] sm:$0xff]   ;;  %v603_v10 = vld [vmem:[#allocation5 + $0x38] sm:$0xff]   ;;  %v607_v12 = vld [vmem:[#allocation7 + $0x10] sm:$0xff]   ;;  %s717_s30 = scalar_lea.vmem %s457_s29, 256  ;;  %p722_p5 = scmp.lt.s32.totalorder %s457_s29, %s457_s29 }
  0x4d   :  { %527 = vmatprep.subr.bf16.mxu0 %v753_v0  ;;  %547 = vmatprep.subr.bf16.mxu1 %v753_v0  ;;  %v604_v11 = vld [vmem:[#allocation2] sm:$0xff]   ;;  %v609_v14 = vld [vmem:[#allocation7 + $0x20] sm:$0xff]   ;;  %v610_v15 = vld [vmem:[#allocation7 + $0x28] sm:$0xff]   ;;  %p718_p4 = scmp.ne.s32.totalorder %s457_s29, %s717_s30  ;;  %p723_p6 = scmp.lt.s32.totalorder %s717_s30, %s717_s30 }
  0x4e   :  { %v608_v13 = vld [vmem:[#allocation7 + $0x18] sm:$0xff]   ;;  %v611_v16 = vld [vmem:[#allocation7 + $0x30] sm:$0xff]   ;;  %v613_v18 = vld [vmem:[#allocation8] sm:$0xff]  }
  0x4f   :  { %v612_v17 = vld [vmem:[#allocation7 + $0x38] sm:$0xff]   ;;  %v614_v19 = vld [vmem:[#allocation8 + $0x8] sm:$0xff]   ;;  %v615_v38 = vld [vmem:[#allocation8 + $0x10] sm:$0xff]   ;;  %p724_p7 = por %p723_p6, %p722_p5 }
  0x50   :  { %528 = vmatpush3.bf16.msra.mxu0 %v597_v2  ;;  %548 = vmatpush3.bf16.msra.mxu1 %v606_v6  ;;  %v470_v20 = vld [vmem:[%s925_s2] ss:$0 sm:$0xff]  ;;  %v617_v40 = vld [vmem:[#allocation8 + $0x20] sm:$0xff]   ;;  %v618_v41 = vld [vmem:[#allocation8 + $0x28] sm:$0xff]  }
  0x51   :  { %529 = vmatprep.subr.bf16.mxu0 %v753_v0  ;;  %549 = vmatprep.subr.bf16.mxu1 %v753_v0  ;;  %v616_v39 = vld [vmem:[#allocation8 + $0x18] sm:$0xff]   ;;  %v619_v42 = vld [vmem:[#allocation8 + $0x30] sm:$0xff]   ;;  %p725_p8 = pnand %p724_p7, %p718_p4 }
  0x52   :  { %v620_v43 = vld [vmem:[#allocation8 + $0x38] sm:$0xff]  }
  0x53   :  { %v480_v44 = vld [vmem:[%s927_s4] ss:$0 sm:$0xff] }
  0x54   :  { %530 = vmatpush3.bf16.msra.mxu0 %v598_v3  ;;  %550 = vmatpush3.bf16.msra.mxu1 %v607_v12  ;;  %v489_v62 = vld [vmem:[%s929_s6] ss:$0 sm:$0xff] }
  0x55   :  { %531 = vmatprep.subr.bf16.mxu0 %v753_v0  ;;  %551 = vmatprep.subr.bf16.mxu1 %v753_v0 }
  0x58   :  { %532 = vmatpush3.bf16.msra.mxu0 %v599_v5  ;;  %552 = vmatpush3.bf16.msra.mxu1 %v608_v13 }
  0x59   :  { %533 = vmatprep.subr.bf16.mxu0 %v753_v0  ;;  %553 = vmatprep.subr.bf16.mxu1 %v753_v0 }
  0x5c   :  { %534 = vmatpush3.bf16.msra.mxu0 %v600_v7  ;;  %554 = vmatpush3.bf16.msra.mxu1 %v609_v14 }
  0x5d   :  { %535 = vmatprep.subr.bf16.mxu0 %v753_v0  ;;  %555 = vmatprep.subr.bf16.mxu1 %v753_v0 }
  0x60   :  { %536 = vmatpush3.bf16.msra.mxu0 %v601_v8  ;;  %556 = vmatpush3.bf16.msra.mxu1 %v610_v15 }
  0x61   :  { %537 = vmatprep.subr.bf16.mxu0 %v753_v0  ;;  %557 = vmatprep.subr.bf16.mxu1 %v753_v0 }
  0x64   :  { %538 = vmatpush3.bf16.msra.mxu0 %v602_v9  ;;  %558 = vmatpush3.bf16.msra.mxu1 %v611_v16 }
  0x65   :  { %539 = vmatprep.subr.bf16.mxu0 %v753_v0  ;;  %559 = vmatprep.subr.bf16.mxu1 %v753_v0 }
  0x68   :  { %540 = vmatpush3.bf16.msra.mxu0 %v603_v10  ;;  %560 = vmatpush3.bf16.msra.mxu1 %v612_v17 }
  0x69   :  { %565 = vmatprep.subr.bf16.mxu0 %v753_v0 }
  0x6b   :  { %542 = vmatmul.mubr.bf16.vlgmr.msra.gmra.mrb[0].mxu0 %v604_v11 }
  0x6c   :  { %581 = vmatprep.mubr.msk.bf16.mxu0 %vm754_vm0, %v753_v0  ;;  %566 = vmatpush3.bf16.msra.mxu0 %v613_v18 }
  0x6d   :  { %567 = vmatprep.subr.bf16.mxu0 %v753_v0 }
  0x70   :  { %568 = vmatpush3.bf16.msra.mxu0 %v614_v19 }
  0x71   :  { %569 = vmatprep.subr.bf16.mxu0 %v753_v0 }
  0x74   :  { %570 = vmatpush3.bf16.msra.mxu0 %v615_v38 }
  0x75   :  { %571 = vmatprep.subr.bf16.mxu0 %v753_v0 }
  0x78   :  { %572 = vmatpush3.bf16.msra.mxu0 %v616_v39 }
  0x79   :  { %573 = vmatprep.subr.bf16.mxu0 %v753_v0 }
  0x7c   :  { %574 = vmatpush3.bf16.msra.mxu0 %v617_v40 }
  0x7d   :  { %575 = vmatprep.subr.bf16.mxu0 %v753_v0 }
  0x80   :  { %576 = vmatpush3.bf16.msra.mxu0 %v618_v41 }
  0x81   :  { %577 = vmatprep.subr.bf16.mxu0 %v753_v0 }
  0x84   :  { %578 = vmatpush3.bf16.msra.mxu0 %v619_v42 }
  0x85   :  { %579 = vmatprep.subr.bf16.mxu0 %v753_v0 }
  0x88   :  { %580 = vmatpush3.bf16.msra.mxu0 %v620_v43 }
 0x13e   :  { %v196_v21 = vpop.f32.mrb[0].mxu0 }
 0x13f   :  { %v197_v22 = vadd.f32 %v470_v20, %v196_v21  ;;  %v543_v23 = vpop.f32.mrb[1].mxu0 }
 0x140   :  { %v199_v24 = vpop.f32.mrb[2].mxu0 }
 0x141   :  { %v205_v25 = vmul.f32 0.70710677, %v197_v22  ;;  %v200_v26 = vadd.f32 %v470_v20, %v199_v24  ;;  %v544_v27 = vpop.f32.mrb[3].mxu0  ;;  %v203_v32 = vmul.f32 0.5, %v197_v22 }
 0x143   :  { %621 = verf.f32 %v205_v25  ;;  %v206_v28 = vmul.f32 0.70710677, %v200_v26  ;;  %v204_v33 = vmul.f32 0.5, %v200_v26 }
 0x145   :  { %623 = verf.f32 %v206_v28 }
 0x14d   :  { %v622_v29 = vpop.eup %621 }
 0x14e   :  { %v209_v30 = vadd.f32 1.0, %v622_v29 }
 0x14f   :  { %v624_v31 = vpop.eup %623 }
 0x150   :  { %v210_v34 = vadd.f32 1.0, %v624_v31  ;;  %v211_v35 = vmul.f32 %v209_v30, %v203_v32 }
 0x152   :  { %v212_v36 = vmul.f32 %v210_v34, %v204_v33 }
 0x154   :  { %v213_v37 = vpack.c.bf16 %v212_v36, %v211_v35 }
 0x156   :  { %562 = vmatmul.mubr.bf16.vlgmr.msra.gmra.mrb[0].mxu1 %v213_v37 }
 0x229   :  { %v319_v45 = vpop.f32.mrb[0].mxu1 }
 0x22a   :  { %v320_v46 = vadd.f32 %v480_v44, %v319_v45  ;;  %v563_v47 = vpop.f32.mrb[1].mxu1 }
 0x22b   :  { %v322_v48 = vpop.f32.mrb[2].mxu1 }
 0x22c   :  { %v328_v49 = vmul.f32 0.70710677, %v320_v46  ;;  %v323_v50 = vadd.f32 %v480_v44, %v322_v48  ;;  %v564_v51 = vpop.f32.mrb[3].mxu1  ;;  %v326_v56 = vmul.f32 0.5, %v320_v46 }
 0x22e   :  { %625 = verf.f32 %v328_v49  ;;  %v329_v52 = vmul.f32 0.70710677, %v323_v50  ;;  %v327_v57 = vmul.f32 0.5, %v323_v50 }
 0x230   :  { %627 = verf.f32 %v329_v52 }
 0x238   :  { %v626_v53 = vpop.eup %625 }
 0x239   :  { %v332_v54 = vadd.f32 1.0, %v626_v53 }
 0x23a   :  { %v628_v55 = vpop.eup %627 }
 0x23b   :  { %v333_v58 = vadd.f32 1.0, %v628_v55  ;;  %v334_v59 = vmul.f32 %v332_v54, %v326_v56 }
 0x23d   :  { %v335_v60 = vmul.f32 %v333_v58, %v327_v57 }
 0x23f   :  { %v336_v61 = vpack.c.bf16 %v335_v60, %v334_v59 }
 0x241   :  { %582 = vmatmul.mubr.bf16.vlgmr.msra.gmra.mrb[4].mxu0 %v336_v61 }
 0x314   :  { %v442_v63 = vpop.f32.mrb[4].mxu0 }
 0x315   :  { %v443_v0 = vadd.f32 %v489_v62, %v442_v63  ;;  %v583_v1 = vpop.f32.mrb[5].mxu0 }
 0x316   :  { %v445_v2 = vpop.f32.mrb[6].mxu0 }
 0x317   :  { %449 = vst [vmem:[#allocation10] sm:$0xff] %v443_v0  ;;  %v446_v3 = vadd.f32 %v489_v62, %v445_v2  ;;  %v584_v4 = vpop.f32.mrb[7].mxu0 }
 0x319   :  { %450 = vst [vmem:[#allocation10 + $0x8] sm:$0xff] %v446_v3 }
 0x31a   :  { %728 = shalt.err (!%p725_p8)
}
 0x31b   :  { %s729_s9 = scalar_lea.hbm %s930_s7, 256 }
 0x31c   :  { %p730_p9 = scmp.ne.s32.totalorder %s930_s7, %s729_s9  ;;  %p733_p10 = scmp.lt.u32.totalorder %s729_s9, %s930_s7 }
 0x31e   :  { %p735_p11 = pnand %p733_p10, %p730_p9 }
 0x320   :  { %738 = shalt.err (!%p735_p11)
}
 0x321   :  { %s756_s16 = smov 128   ;;  %s757_s0 = smov 8  }
 0x322   :  { %462 = dma.vmem_to_hbm [thread:$0]  %s457_s29, 256, %s930_s7, [#allocation4], %s756_s16, %s756_s16, %s757_s0  }
 0x323   :  { %745 = dma.done.wait [#allocation4], 256  }
 0x324   :  { %746 = vsyncadd [#allocation4], 4294967040 }
 0x325   :  { %466 = vsyncpa [#allocation3], 1 }
 0x326   :  { %467 = vsyncpa [#allocation6], 1 }
 0x327   :  { %468 = vsyncpa [#allocation9], 1 }
 0x328   :  { %469 = vsyncpa [#allocation4], 1 }

// kernel: tpu_custom_call.1
= control target key start
LH: loop header
LB: loop body
LE: loop exit
PB: predicated region body
PF: predicated region fallthrough
CT: control target
= control target key end

     0   :  { %8 = vsyncpa [#allocation3], 0  ;;  %s417_s0 = inlined_call_operand.hbm [shape: bf16[16,128], index: 0, kind: input, shape index: {}]   ;;  %s418_s1 = inlined_call_operand.hbm [shape: bf16[128,128], index: 1, kind: input, shape index: {}]   ;;  %s419_s2 = inlined_call_operand.vmem [shape: f32[1,128], index: 2, kind: input, shape index: {}]   ;;  %s420_s3 = inlined_call_operand.hbm [shape: bf16[16,128], index: 3, kind: output, shape index: {}]  }
   0x1   :  { %9 = vsyncpa [#allocation6], 0 }
   0x2   :  { %10 = vsyncpa [#allocation4], 0  ;;  %s342_s12 = smov [#allocation2]   ;;  %s270_s16 = scalar_lea.hbm %s417_s0, 128 }
   0x3   :  { %s16_s13 = sshll.u32 %s342_s12, 4  ;;  %p271_p0 = scmp.ne.s32.totalorder %s417_s0, %s270_s16  ;;  %s17_s13 = int_to_ptr.vmem [resolvable:$true] %s16_s13 }
   0x4   :  { %p274_p1 = scmp.lt.u32.totalorder %s270_s16, %s417_s0 }
   0x6   :  { %p276_p2 = pnand %p274_p1, %p271_p0 }
   0x8   :  { %279 = shalt.err (!%p276_p2)
}
   0x9   :  { %s280_s21 = scalar_lea.vmem %s17_s13, 128  ;;  %p285_p4 = scmp.lt.s32.totalorder %s17_s13, %s17_s13 }
   0xa   :  { %p281_p3 = scmp.ne.s32.totalorder %s17_s13, %s280_s21  ;;  %p286_p5 = scmp.lt.s32.totalorder %s280_s21, %s280_s21 }
   0xc   :  { %p287_p6 = por %p286_p5, %p285_p4 }
   0xe   :  { %p288_p7 = pnand %p287_p6, %p281_p3 }
  0x10   :  { %291 = shalt.err (!%p288_p7)
}
  0x11   :  { %s343_s22 = smov 64   ;;  %s344_s23 = smov 4  }
  0x12   :  { %22 = dma.hbm_to_vmem [thread:$0]  %s417_s0, 128, %s17_s13, [#allocation3], %s343_s22, %s343_s22, %s344_s23  }
  0x13   :  { %s345_s26 = smov [#allocation5]   ;;  %s292_s30 = scalar_lea.hbm %s418_s1, 1024 }
  0x14   :  { %s28_s27 = sshll.u32 %s345_s26, 4  ;;  %p293_p8 = scmp.ne.s32.totalorder %s418_s1, %s292_s30  ;;  %s29_s27 = int_to_ptr.vmem [resolvable:$true] %s28_s27 }
  0x15   :  { %p296_p9 = scmp.lt.u32.totalorder %s292_s30, %s418_s1 }
  0x17   :  { %p298_p10 = pnand %p296_p9, %p293_p8 }
  0x19   :  { %301 = shalt.err (!%p298_p10)
}
  0x1a   :  { %s302_s8 = scalar_lea.vmem %s29_s27, 1024  ;;  %p307_p12 = scmp.lt.s32.totalorder %s29_s27, %s29_s27 }
  0x1b   :  { %p303_p11 = scmp.ne.s32.totalorder %s29_s27, %s302_s8  ;;  %p308_p13 = scmp.lt.s32.totalorder %s302_s8, %s302_s8 }
  0x1d   :  { %p309_p0 = por %p308_p13, %p307_p12 }
  0x1f   :  { %p310_p1 = pnand %p309_p0, %p303_p11 }
  0x21   :  { %313 = shalt.err (!%p310_p1)
}
  0x22   :  { %34 = dma.hbm_to_vmem [thread:$0]  %s418_s1, 1024, %s29_s27, [#allocation6], %s343_s22, %s343_s22, %s344_s23  }
  0x23   :  { %336 = dma.done.wait [#allocation3], 128  }
  0x24   :  { %337 = vsyncadd [#allocation3], 4294967168 }
  0x25   :  { %338 = dma.done.wait [#allocation6], 1024  }
  0x26   :  { %339 = vsyncadd [#allocation6], 4294966272  ;;  %v346_v0 = vmov 0.0   ;;  %vm347_vm0 = vmmov 0   ;;  %v257_v1 = vld [vmem:[#allocation5] sm:$0xff]   ;;  %v258_v2 = vld [vmem:[#allocation5 + $0x8] sm:$0xff]  }
  0x27   :  { %230 = vmatprep.subr.bf16.mxu0 %v346_v0  ;;  %246 = vmatprep.mubr.msk.bf16.mxu0 %vm347_vm0, %v346_v0  ;;  %v259_v3 = vld [vmem:[#allocation5 + $0x10] sm:$0xff]   ;;  %v260_v4 = vld [vmem:[#allocation5 + $0x18] sm:$0xff]   ;;  %v261_v5 = vld [vmem:[#allocation5 + $0x20] sm:$0xff]   ;;  %s348_s11 = smov [#allocation7]  }
  0x28   :  { %231 = vmatpush3.bf16.msra.mxu0 %v257_v1  ;;  %v262_v6 = vld [vmem:[#allocation5 + $0x28] sm:$0xff]   ;;  %v263_v7 = vld [vmem:[#allocation5 + $0x30] sm:$0xff]   ;;  %v264_v8 = vld [vmem:[#allocation5 + $0x38] sm:$0xff]   ;;  %s189_s12 = sshll.u32 %s348_s11, 4  ;;  %s190_s12 = int_to_ptr.vmem [resolvable:$true] %s189_s12 }
  0x29   :  { %232 = vmatprep.subr.bf16.mxu0 %v346_v0  ;;  %v265_v9 = vld [vmem:[#allocation2] sm:$0xff]   ;;  %p319_p3 = scmp.lt.s32.totalorder %s190_s12, %s190_s12 }
  0x2a   :  { %v202_v10 = vld [vmem:[%s419_s2] ss:$0 sm:$0xff]  ;;  %s314_s2 = scalar_lea.vmem %s190_s12, 128 }
  0x2b   :  { %p315_p2 = scmp.ne.s32.totalorder %s190_s12, %s314_s2  ;;  %p320_p4 = scmp.lt.s32.totalorder %s314_s2, %s314_s2 }
  0x2c   :  { %233 = vmatpush3.bf16.msra.mxu0 %v258_v2 }
  0x2d   :  { %234 = vmatprep.subr.bf16.mxu0 %v346_v0  ;;  %p321_p5 = por %p320_p4, %p319_p3 }
  0x2f   :  { %p322_p6 = pnand %p321_p5, %p315_p2 }
  0x30   :  { %235 = vmatpush3.bf16.msra.mxu0 %v259_v3 }
  0x31   :  { %236 = vmatprep.subr.bf16.mxu0 %v346_v0 }
  0x34   :  { %237 = vmatpush3.bf16.msra.mxu0 %v260_v4 }
  0x35   :  { %238 = vmatprep.subr.bf16.mxu0 %v346_v0 }
  0x38   :  { %239 = vmatpush3.bf16.msra.mxu0 %v261_v5 }
  0x39   :  { %240 = vmatprep.subr.bf16.mxu0 %v346_v0 }
  0x3c   :  { %241 = vmatpush3.bf16.msra.mxu0 %v262_v6 }
  0x3d   :  { %242 = vmatprep.subr.bf16.mxu0 %v346_v0 }
  0x40   :  { %243 = vmatpush3.bf16.msra.mxu0 %v263_v7 }
  0x41   :  { %244 = vmatprep.subr.bf16.mxu0 %v346_v0 }
  0x44   :  { %245 = vmatpush3.bf16.msra.mxu0 %v264_v8 }
  0x47   :  { %247 = vmatmul.mubr.bf16.vlgmr.msra.gmra.mrb[0].mxu0 %v265_v9 }
 0x11a   :  { %v157_v11 = vpop.f32.mrb[0].mxu0 }
 0x11b   :  { %v158_v12 = vadd.f32 %v202_v10, %v157_v11  ;;  %v248_v13 = vpop.f32.mrb[1].mxu0 }
 0x11c   :  { %v160_v14 = vpop.f32.mrb[2].mxu0 }
 0x11d   :  { %v166_v15 = vmul.f32 0.70710677, %v158_v12  ;;  %v161_v16 = vadd.f32 %v202_v10, %v160_v14  ;;  %v249_v17 = vpop.f32.mrb[3].mxu0  ;;  %v164_v22 = vmul.f32 0.5, %v158_v12 }
 0x11f   :  { %266 = verf.f32 %v166_v15  ;;  %v167_v18 = vmul.f32 0.70710677, %v161_v16  ;;  %v165_v23 = vmul.f32 0.5, %v161_v16 }
 0x121   :  { %268 = verf.f32 %v167_v18 }
 0x129   :  { %v267_v19 = vpop.eup %266 }
 0x12a   :  { %v170_v20 = vadd.f32 1.0, %v267_v19 }
 0x12b   :  { %v269_v21 = vpop.eup %268 }
 0x12c   :  { %v171_v24 = vadd.f32 1.0, %v269_v21  ;;  %v172_v25 = vmul.f32 %v170_v20, %v164_v22 }
 0x12e   :  { %v173_v26 = vmul.f32 %v171_v24, %v165_v23 }
 0x130   :  { %v219_v27 = vpack.c.bf16 %v173_v26, %v172_v25 }
 0x132   :  { %220 = vst [vmem:[#allocation7] sm:$0xff] %v219_v27  }
 0x133   :  { %325 = shalt.err (!%p322_p6)
}
 0x134   :  { %s326_s15 = scalar_lea.hbm %s420_s3, 128 }
 0x135   :  { %p327_p7 = scmp.ne.s32.totalorder %s420_s3, %s326_s15  ;;  %p330_p8 = scmp.lt.u32.totalorder %s326_s15, %s420_s3 }
 0x137   :  { %p332_p9 = pnand %p330_p8, %p327_p7 }
 0x139   :  { %335 = shalt.err (!%p332_p9)
}
 0x13a   :  { %195 = dma.vmem_to_hbm [thread:$0]  %s190_s12, 128, %s420_s3, [#allocation4], %s343_s22, %s343_s22, %s344_s23  }
 0x13b   :  { %340 = dma.done.wait [#allocation4], 128  }
 0x13c   :  { %341 = vsyncadd [#allocation4], 4294967168 }
 0x13d   :  { %199 = vsyncpa [#allocation3], 1 }
 0x13e   :  { %200 = vsyncpa [#allocation6], 1 }
 0x13f   :  { %201 = vsyncpa [#allocation4], 1 }

</bundles_post_ra>
